<compile_context>
chip_gen: v5e
topology: v5e:2x2
jax: 0.10.0
libtpu: 0.0.40
codegen_flags: <defaults>
</compile_context>

<pallas_src>
import jax
import jax.numpy as jnp
from jax.experimental import pallas as pl
from jax.experimental.pallas import tpu as pltpu


def _attn_kernel(x_ref, w_ref, o_ref):
    # x_ref: (Bt, T, Dp) bf16 — Dp = 128-lane-padded head dim; column D holds 1.0
    #        (bias column), remaining padded columns are zero.
    # w_ref: (Dp, 3*Dp) bf16 — [wq.T*inv_scale | wk.T | wv.T]; bias in row D of
    #        each slab, zeros elsewhere in the padding.
    # o_ref: (Bt, T, Dp) f32 — lane-dense output; columns >= D are zero.
    Bt, T, Dp = x_ref.shape

    x2 = x_ref[...].reshape(Bt * T, Dp)

    # Fused QKV projection + bias + q-scaling in ONE bf16 MXU matmul (f32 acc).
    qkv = jnp.dot(x2, w_ref[...], preferred_element_type=jnp.float32)  # (Bt*T, 3Dp)

    # 128-lane-aligned slices: no intra-tile cuts, no relayout copies.
    q = qkv[:, 0 * Dp:1 * Dp].reshape(Bt, T, Dp)
    k = qkv[:, 1 * Dp:2 * Dp].reshape(Bt, T, Dp)
    v = qkv[:, 2 * Dp:3 * Dp].reshape(Bt, T, Dp)

    # energy[b, i, j] = sum_d q[b,i,d] * k[b,j,d] — contract last dims directly
    # (no explicit transpose). Padded lanes of q/k are zero, so this is exact.
    energy = jax.lax.dot_general(
        q.astype(jnp.bfloat16), k.astype(jnp.bfloat16),
        dimension_numbers=(((2,), (2,)), ((0,), (0,))),
        preferred_element_type=jnp.float32)                  # (Bt, T, T)

    # Numerically-stabilized softmax; normalization deferred past the V matmul.
    energy = energy - jnp.max(energy, axis=-1, keepdims=True)
    p = jnp.exp(energy)                                      # unnormalized
    row_sum = jnp.sum(p, axis=-1, keepdims=True)             # (Bt, T, 1)

    out = jax.lax.dot_general(
        p.astype(jnp.bfloat16), v.astype(jnp.bfloat16),
        dimension_numbers=(((2,), (1,)), ((0,), (0,))),
        preferred_element_type=jnp.float32)                  # (Bt, T, Dp)

    # Deferred normalization: EUP reciprocal (own VLIW slot) + broadcast multiply.
    out = out * pl.reciprocal(row_sum, approx=True)

    o_ref[...] = out.astype(o_ref.dtype)


def _pick_block_b(B, T, target_rows=4096):
    """Largest divisor of B with block_b*T <= target_rows, preferring a grid of
    >= 2 steps (so v7x megacore can shard the batch axis across both TCs)."""
    best = 1
    for d in range(1, B + 1):
        if B % d != 0:
            continue
        if d * T > target_rows:
            continue
        if B >= 2 and (B // d) < 2:
            continue
        best = d
    return best


def _round_up(n, m):
    return ((n + m - 1) // m) * m


@jax.jit
def one_head_self_attention(x, wq, wk, wv, bq, bk, bv):
    """x: (B, T, D).  w*: PyTorch-style Linear weights (out, in) = (D, D).  b*: (D,)."""
    B, T, D = x.shape
    inv_scale = 1.0 / (float(D) ** 0.5)

    # Lane-dense padded head dim; one extra column reserved for the bias "1".
    Dp = _round_up(D + 1, 128)

    # x padded to [x | 1 | 0...], cast to bf16 once here (not per grid step).
    ones_col = jnp.ones((B, T, 1), x.dtype)
    zeros = jnp.zeros((B, T, Dp - D - 1), x.dtype)
    x_pad = jnp.concatenate([x, ones_col, zeros], axis=-1).astype(jnp.bfloat16)

    # Fused, padded weight: each (Dp, Dp) slab holds W.T in [:D,:D] and the bias
    # in row D; the q slab (weights + bias) is pre-scaled by 1/sqrt(D).
    def slab(w, b):
        m = jnp.zeros((Dp, Dp), jnp.float32)
        m = m.at[:D, :D].set(w.T.astype(jnp.float32))
        m = m.at[D, :D].set(b.astype(jnp.float32))
        return m

    w_qkv = jnp.concatenate(
        [slab(wq * inv_scale, bq * inv_scale), slab(wk, bk), slab(wv, bv)],
        axis=1).astype(jnp.bfloat16)                          # (Dp, 3*Dp)

    block_b = _pick_block_b(B, T)
    grid = (B // block_b,)

    # Generation-aware VMEM budget: never request the entire physical VMEM.
    try:
        vmem_cap = int(pltpu.get_tpu_info().vmem_capacity_bytes)
    except Exception:
        vmem_cap = 64 * 1024 * 1024  # conservative: v7x per-TC capacity
    x_tile = block_b * T * Dp * 2
    o_tile = block_b * T * Dp * 4
    w_bytes = Dp * 3 * Dp * 2
    scratch = (block_b * T * (3 * Dp * 4 + 3 * Dp * 2)      # qkv f32 + bf16 copies
               + block_b * T * T * (4 + 2)                   # scores f32 + bf16 p
               + block_b * T * Dp * 4)                       # out f32
    est = 2 * (x_tile + o_tile + w_bytes) + scratch
    vmem_limit = int(min(int(0.75 * vmem_cap), max(32 * 1024 * 1024, 2 * est)))

    cost = pl.CostEstimate(
        flops=2 * B * T * (3 * Dp * Dp + 2 * T * Dp),
        transcendentals=B * T * T + B * T,
        bytes_accessed=B * T * Dp * 2 + Dp * 3 * Dp * 2 + B * T * Dp * 4,
    )

    # TODO(synk): for large T, add a KV-tiled flash-style grid axis (online softmax,
    # kv axis marked "arbitrary") sized against v7x's 64 MiB VMEM; whole-T resident
    # is fine at these shapes.
    out_pad = pl.pallas_call(
        _attn_kernel,
        out_shape=jax.ShapeDtypeStruct((B, T, Dp), x.dtype),
        grid_spec=pltpu.PrefetchScalarGridSpec(
            num_scalar_prefetch=0,
            grid=grid,
            in_specs=[
                pl.BlockSpec((block_b, T, Dp), lambda b: (b, 0, 0)),
                pl.BlockSpec((Dp, 3 * Dp), lambda b: (0, 0)),
            ],
            out_specs=pl.BlockSpec((block_b, T, Dp), lambda b: (b, 0, 0)),
        ),
        compiler_params=pltpu.CompilerParams(
            dimension_semantics=("parallel",),
            vmem_limit_bytes=vmem_limit,
        ),
        cost_estimate=cost,
    )(x_pad, w_qkv)

    return out_pad[..., :D]


def _reference(x, wq, wk, wv, bq, bk, bv):
    D = x.shape[-1]
    q = jnp.einsum("btd,od->bto", x, wq) + bq
    k = jnp.einsum("btd,od->bto", x, wk) + bk
    v = jnp.einsum("btd,od->bto", x, wv) + bv
    energy = jnp.einsum("btd,bsd->bts", q, k) / (D ** 0.5)
    p = jax.nn.softmax(energy, axis=-1)
    return jnp.einsum("bts,bsd->btd", p, v)


if __name__ == "__main__":
    B, T, D = 2, 8, 32
    key = jax.random.PRNGKey(0)
    kx, kwq, kwk, kwv, kbq, kbk, kbv = jax.random.split(key, 7)

    x = jax.random.normal(kx, (B, T, D), dtype=jnp.float32)
    # PyTorch Linear shapes: weight (D, D), bias (D,)
    bound = 1.0 / (D ** 0.5)
    wq = jax.random.uniform(kwq, (D, D), jnp.float32, -bound, bound)
    wk = jax.random.uniform(kwk, (D, D), jnp.float32, -bound, bound)
    wv = jax.random.uniform(kwv, (D, D), jnp.float32, -bound, bound)
    bq = jax.random.uniform(kbq, (D,), jnp.float32, -bound, bound)
    bk = jax.random.uniform(kbk, (D,), jnp.float32, -bound, bound)
    bv = jax.random.uniform(kbv, (D,), jnp.float32, -bound, bound)

    out = jax.block_until_ready(one_head_self_attention(x, wq, wk, wv, bq, bk, bv))

    ref = _reference(x, wq, wk, wv, bq, bk, bv)
    assert out.shape == (B, T, D)
    # bf16 MXU operands throughout + approximate reciprocal -> relaxed tolerance.
    assert jnp.allclose(out, ref, atol=3e-2, rtol=3e-2), "mismatch vs reference"

    print("KERNEL_OK")
</pallas_src>

<mosaic_0001>
module attributes {stable_mosaic.version = 11 : i64} {
  func.func @_attn_kernel(%arg0: i32, %arg1: memref<1x8x128xbf16, #tpu.memory_space<vmem>>, %arg2: memref<128x384xbf16, #tpu.memory_space<vmem>>, %arg3: memref<1x8x128xf32, #tpu.memory_space<vmem>>) attributes {dimension_semantics = [#tpu.dimension_semantics<parallel>], iteration_bounds = array<i64: 2>, scalar_prefetch = 0 : i64, scratch_operands = 0 : i64, tpu.core_type = #tpu.core_type<tc>, window_params = [{transform_indices = @transform_0, window_bounds = array<i64: 1, 8, 128>}, {pipeline_mode = #tpu.pipeline_mode<synchronous>, transform_indices = @transform_1, window_bounds = array<i64: 128, 384>}, {transform_indices = @transform_2, window_bounds = array<i64: 1, 8, 128>}]} {
    %c0 = arith.constant 0 : index
    %c0_0 = arith.constant 0 : index
    %c0_1 = arith.constant 0 : index
    %0 = vector.load %arg1[%c0, %c0_0, %c0_1] : memref<1x8x128xbf16, #tpu.memory_space<vmem>>, vector<1x8x128xbf16>
    %1 = vector.shape_cast %0 : vector<1x8x128xbf16> to vector<8x128xbf16>
    %c0_2 = arith.constant 0 : index
    %c0_3 = arith.constant 0 : index
    %2 = vector.load %arg2[%c0_2, %c0_3] : memref<128x384xbf16, #tpu.memory_space<vmem>>, vector<128x384xbf16>
    %cst = arith.constant dense<0.000000e+00> : vector<8x384xf32>
    %3 = tpu.matmul %1, %2, %cst {dimension_numbers = #tpu.dot_dimension_numbers<[1], [0], [0], [1], [0, 0, 1, 1], [], []>} : vector<8x128xbf16>, vector<128x384xbf16>, vector<8x384xf32> -> vector<8x384xf32>
    %4 = vector.extract_strided_slice %3 {offsets = [0, 0], sizes = [8, 128], strides = [1, 1]} : vector<8x384xf32> to vector<8x128xf32>
    %5 = vector.shape_cast %4 : vector<8x128xf32> to vector<1x8x128xf32>
    %6 = vector.extract_strided_slice %3 {offsets = [0, 128], sizes = [8, 128], strides = [1, 1]} : vector<8x384xf32> to vector<8x128xf32>
    %7 = vector.shape_cast %6 : vector<8x128xf32> to vector<1x8x128xf32>
    %8 = vector.extract_strided_slice %3 {offsets = [0, 256], sizes = [8, 128], strides = [1, 1]} : vector<8x384xf32> to vector<8x128xf32>
    %9 = vector.shape_cast %8 : vector<8x128xf32> to vector<1x8x128xf32>
    %10 = arith.truncf %5 : vector<1x8x128xf32> to vector<1x8x128xbf16>
    %11 = arith.truncf %7 : vector<1x8x128xf32> to vector<1x8x128xbf16>
    %cst_4 = arith.constant dense<0.000000e+00> : vector<1x8x8xf32>
    %12 = tpu.matmul %10, %11, %cst_4 {dimension_numbers = #tpu.dot_dimension_numbers<[2], [2], [1], [1], [0, 0, 0, 1, 1, 1], [0], [0]>} : vector<1x8x128xbf16>, vector<1x8x128xbf16>, vector<1x8x8xf32> -> vector<1x8x8xf32>
    %cst_5 = arith.constant dense<0xFF800000> : vector<1x8xf32>
    %13 = vector.multi_reduction <maximumf>, %12, %cst_5 [2] : vector<1x8x8xf32> to vector<1x8xf32>
    %14 = vector.shape_cast %13 : vector<1x8xf32> to vector<1x8x1xf32>
    %15 = vector.broadcast %14 : vector<1x8x1xf32> to vector<1x8x8xf32>
    %16 = arith.subf %12, %15 : vector<1x8x8xf32>
    %17 = math.exp %16 : vector<1x8x8xf32>
    %cst_6 = arith.constant dense<0.000000e+00> : vector<1x8xf32>
    %18 = vector.multi_reduction <add>, %17, %cst_6 [2] : vector<1x8x8xf32> to vector<1x8xf32>
    %19 = vector.shape_cast %18 : vector<1x8xf32> to vector<1x8x1xf32>
    %20 = arith.truncf %17 : vector<1x8x8xf32> to vector<1x8x8xbf16>
    %21 = arith.truncf %9 : vector<1x8x128xf32> to vector<1x8x128xbf16>
    %cst_7 = arith.constant dense<0.000000e+00> : vector<1x8x128xf32>
    %22 = tpu.matmul %20, %21, %cst_7 {dimension_numbers = #tpu.dot_dimension_numbers<[2], [1], [1], [2], [0, 0, 0, 1, 1, 2], [0], [0]>} : vector<1x8x8xbf16>, vector<1x8x128xbf16>, vector<1x8x128xf32> -> vector<1x8x128xf32>
    %23 = tpu.reciprocal %19 {approx = true} : vector<1x8x1xf32> -> vector<1x8x1xf32>
    %24 = vector.broadcast %23 : vector<1x8x1xf32> to vector<1x8x128xf32>
    %25 = arith.mulf %22, %24 : vector<1x8x128xf32>
    %c0_8 = arith.constant 0 : index
    %c0_9 = arith.constant 0 : index
    %c0_10 = arith.constant 0 : index
    %26 = vector.load %arg3[%c0_8, %c0_9, %c0_10] : memref<1x8x128xf32, #tpu.memory_space<vmem>>, vector<1x8x128xf32>
    tpu.vector_store %arg3[%c0_8, %c0_9, %c0_10], %25 {strides = array<i32>} : memref<1x8x128xf32, #tpu.memory_space<vmem>>, vector<1x8x128xf32>,
    return
  }
  func.func @transform_0(%arg0: i32) -> (i32, i32, i32) {
    %c0_i32 = arith.constant 0 : i32
    %c0_i32_0 = arith.constant 0 : i32
    %c0_i32_1 = arith.constant 0 : i32
    return %arg0, %c0_i32, %c0_i32_0 : i32, i32, i32
  }
  func.func @transform_1(%arg0: i32) -> (i32, i32) {
    %c0_i32 = arith.constant 0 : i32
    %c0_i32_0 = arith.constant 0 : i32
    %c0_i32_1 = arith.constant 0 : i32
    return %c0_i32, %c0_i32_0 : i32, i32
  }
  func.func @transform_2(%arg0: i32) -> (i32, i32, i32) {
    %c0_i32 = arith.constant 0 : i32
    %c0_i32_0 = arith.constant 0 : i32
    %c0_i32_1 = arith.constant 0 : i32
    return %arg0, %c0_i32, %c0_i32_0 : i32, i32, i32
  }
}

</mosaic_0001>

<bundles_post_ra>
// kernel: one_head_self_attention.1
= control target key start
LH: loop header
LB: loop body
LE: loop exit
PB: predicated region body
PF: predicated region fallthrough
CT: control target
= control target key end

     0   :  { %7 = vsyncpa [#allocation3], 0  ;;  %s950_s0 = inlined_call_operand.vmem [shape: bf16[2,8,128], index: 0, kind: input, shape index: {}]   ;;  %s951_s1 = inlined_call_operand.vmem [shape: bf16[128,384], index: 1, kind: input, shape index: {}]   ;;  %s952_s2 = inlined_call_operand.hbm [shape: f32[2,8,128], index: 2, kind: output, shape index: {}]  }
   0x1   :  { %9 = vsyncpa [#allocation3 + $0x1], 0  ;;  %s718_s9 = smov 0   ;;  %s720_s10 = smov 0  }
   0x2   :  { %s722_s11 = smov 0   ;;  %s724_s12 = smov 0  }
   0x3 LB: > { %s739_s13 = sadd.s32 4294967295, %s701_s12   ;;  %s465_s14 = sadd.s32 4294967294, %s701_s12   ;;  %s701_s12 = sphi %s724_s12, %s958_s12   ;;  %s697_s11 = sphi %s722_s11, %s957_s11   ;;  %s693_s10 = sphi %s720_s10, %s956_s10   ;;  %s689_s9 = sphi %s718_s9, %s955_s9  }
   0x4   : > { %s743_s15 = sadd.s32 1, %s701_s12   ;;  %s69_s16 = sadd.s32 1, %s697_s11 }
   0x5   : > { %s66_s17 = ssub.s32 %s701_s12, %s743_s15  ;;  %p79_p0 = scmp.ne.s32.totalorder %s697_s11, %s693_s10 }
   0x6   : > { %p67_p1 = scmp.eq.s32.totalorder %s66_s17, 0  ;;  %p80_p2 = scmp.eq.s32.totalorder %s739_s13, 1 }
   0x7   : > { %p85_p3 = scmp.ne.s32.totalorder %s693_s10, %s689_s9  ;;  %p86_p4 = scmp.eq.s32.totalorder %s465_s14, 1 }
   0x8   : > { %s754_s18 = scalar_select %p67_p1, %s697_s11, %s69_s16  }
   0x9   : > { %p756_p5 = por %p80_p2, %p79_p0  ;;  %p760_p6 = por %p86_p4, %p85_p3 }
   0xa   : > { %p468_p7 = scmp.ge.s32.totalorder %s701_s12, 1  ;;  %p114_p8 = scmp.lt.s32.totalorder %s701_s12, 3 }
   0xc   : > { %p115_p9 = pnand %p468_p7, %p114_p8 }
   0xd   : > { %p135_p10 = scmp.lt.s32.totalorder (!%p115_p9), %s739_s13, 1  ;;  %s132_s27 = sand.u32 (!%p115_p9), 1, %s693_s10  }
   0xe   : > { %118 = sbr.rel (%p115_p9) target bundleno = 591 (0x24f), region = 28  ;;  %s569_s28 = sshll.u32 (!%p115_p9), %s739_s13, 3 }
   0xf   : > { %s391_s8 = scalar_lea.sflag (!%p115_p9), [#allocation3], %s132_s27  ;;  %s659_s21 = scalar_lea.hbm (!%p115_p9), %s952_s2, 16 }
  0x13   : > { %v557_v0 = vld [vmem:[%s951_s1 + $0xa8] sm:$0xf]  ;;  %v594_v1 = vld [vmem:[%s951_s1 + $0xb0] sm:$0xf0]  ;;  %v593_v2 = vld [vmem:[%s951_s1 + $0xac] sm:$0xf] }
  0x14   : > { %v558_v3 = vor.u32 %v594_v1, %v557_v0  ;;  %v559_v4 = vld [vmem:[%s951_s1 + $0xb4] sm:$0xf0]  ;;  %v545_v5 = vld [vmem:[%s951_s1 + $0x90] sm:$0xf]  ;;  %v591_v6 = vld [vmem:[%s951_s1 + $0x98] sm:$0xf0] }
  0x15   : > { %v562_v7 = vor.u32 %v593_v2, %v559_v4  ;;  %v590_v8 = vld [vmem:[%s951_s1 + $0x94] sm:$0xf]  ;;  %v547_v9 = vld [vmem:[%s951_s1 + $0x9c] sm:$0xf0]  ;;  %v546_v10 = vor.u32 %v591_v6, %v545_v5  ;;  %v533_v12 = vld [vmem:[%s951_s1 + $0x78] sm:$0xf] }
  0x16   : > { %301 = vmatpush.bf16.msra.mxu0 %v558_v3  ;;  %v550_v11 = vor.u32 %v590_v8, %v547_v9  ;;  %v588_v13 = vld [vmem:[%s951_s1 + $0x80] sm:$0xf0]  ;;  %v587_v14 = vld [vmem:[%s951_s1 + $0x7c] sm:$0xf]  ;;  %v535_v15 = vld [vmem:[%s951_s1 + $0x84] sm:$0xf0] }
  0x17   : > { %314 = vmatpush.bf16.msra.mxu1 %v562_v7  ;;  %v534_v16 = vor.u32 %v588_v13, %v533_v12  ;;  %v538_v17 = vor.u32 %v587_v14, %v535_v15  ;;  %v521_v18 = vld [vmem:[%s951_s1 + $0x60] sm:$0xf]  ;;  %v585_v19 = vld [vmem:[%s951_s1 + $0x68] sm:$0xf0]  ;;  %v584_v20 = vld [vmem:[%s951_s1 + $0x64] sm:$0xf] }
  0x18   : > { %v523_v21 = vld [vmem:[%s951_s1 + $0x6c] sm:$0xf0]  ;;  %v522_v22 = vor.u32 %v585_v19, %v521_v18  ;;  %v509_v24 = vld [vmem:[%s951_s1 + $0x48] sm:$0xf]  ;;  %v582_v25 = vld [vmem:[%s951_s1 + $0x50] sm:$0xf0] }
  0x19   : > { %v526_v23 = vor.u32 %v584_v20, %v523_v21  ;;  %v581_v26 = vld [vmem:[%s951_s1 + $0x4c] sm:$0xf]  ;;  %v511_v27 = vld [vmem:[%s951_s1 + $0x54] sm:$0xf0]  ;;  %v510_v28 = vor.u32 %v582_v25, %v509_v24  ;;  %v497_v30 = vld [vmem:[%s951_s1 + $0x30] sm:$0xf] }
  0x1a   : > { %302 = vmatpush.bf16.msra.mxu0 %v546_v10  ;;  %v514_v29 = vor.u32 %v581_v26, %v511_v27  ;;  %v579_v31 = vld [vmem:[%s951_s1 + $0x38] sm:$0xf0]  ;;  %v578_v32 = vld [vmem:[%s951_s1 + $0x34] sm:$0xf]  ;;  %v499_v33 = vld [vmem:[%s951_s1 + $0x3c] sm:$0xf0] }
  0x1b   : > { %315 = vmatpush.bf16.msra.mxu1 %v550_v11  ;;  %v498_v34 = vor.u32 %v579_v31, %v497_v30  ;;  %v502_v35 = vor.u32 %v578_v32, %v499_v33  ;;  %v485_v36 = vld [vmem:[%s951_s1 + $0x18] sm:$0xf]  ;;  %v576_v37 = vld [vmem:[%s951_s1 + $0x20] sm:$0xf0]  ;;  %v575_v38 = vld [vmem:[%s951_s1 + $0x1c] sm:$0xf] }
  0x1c   : > { %v487_v39 = vld [vmem:[%s951_s1 + $0x24] sm:$0xf0]  ;;  %s136_s17 = scalar_select %p135_p10, %s739_s13, 1  ;;  %v486_v40 = vor.u32 %v576_v37, %v485_v36  ;;  %v473_v42 = vld [vmem:[%s951_s1] sm:$0xf]  ;;  %vm355_vm0 = vcmask 64512  }
  0x1d   : > { %v490_v41 = vor.u32 %v575_v38, %v487_v39  ;;  %v573_v43 = vld [vmem:[%s951_s1 + $0x8] sm:$0xf0]  ;;  %v572_v44 = vld [vmem:[%s951_s1 + $0x4] sm:$0xf]  ;;  %v475_v45 = vld [vmem:[%s951_s1 + $0xc] sm:$0xf0] }
  0x1e   : > { %303 = vmatpush.bf16.msra.mxu0 %v534_v16  ;;  %s470_s29 = sshll.u32 %s136_s17, 2  ;;  %v474_v46 = vor.u32 %v573_v43, %v473_v42  ;;  %v478_v47 = vor.u32 %v572_v44, %v475_v45  ;;  %v565_v49 = vld [vmem:[%s951_s1 + $0xb0] sm:$0xf]  ;;  %v595_v50 = vld [vmem:[%s951_s1 + $0xb8] sm:$0xf0]  ;;  %vm370_vm1 = vcmask 1043456  }
  0x1f   : > { %316 = vmatpush.bf16.msra.mxu1 %v538_v17  ;;  %s138_s4 = scalar_lea.vmem %s950_s0, %s470_s29  ;;  %v553_v51 = vld [vmem:[%s951_s1 + $0x98] sm:$0xf]  ;;  %v566_v52 = vor.u32 %v595_v50, %v565_v49  ;;  %v592_v53 = vld [vmem:[%s951_s1 + $0xa0] sm:$0xf0]  ;;  %v541_v55 = vld [vmem:[%s951_s1 + $0x80] sm:$0xf] }
  0x20   : > { %v140_v48 = vld [vmem:[%s138_s4] sm:$0xf]  ;;  %v554_v54 = vor.u32 %v592_v53, %v553_v51  ;;  %v589_v56 = vld [vmem:[%s951_s1 + $0x88] sm:$0xf0]  ;;  %v529_v58 = vld [vmem:[%s951_s1 + $0x68] sm:$0xf]  ;;  %s401_s4 = scalar_lea.hbm %s952_s2, %s569_s28 }
  0x21   : > { %327 = vmatpush.bf16.msra.mxu2 %v566_v52  ;;  %v542_v57 = vor.u32 %v589_v56, %v541_v55  ;;  %v586_v59 = vld [vmem:[%s951_s1 + $0x70] sm:$0xf0]  ;;  %v517_v61 = vld [vmem:[%s951_s1 + $0x50] sm:$0xf]  ;;  %v583_v62 = vld [vmem:[%s951_s1 + $0x58] sm:$0xf0] }
  0x22   : > { %304 = vmatpush.bf16.msra.mxu0 %v522_v22  ;;  %v530_v60 = vor.u32 %v586_v59, %v529_v58  ;;  %v518_v63 = vor.u32 %v583_v62, %v517_v61  ;;  %v505_v0 = vld [vmem:[%s951_s1 + $0x38] sm:$0xf]  ;;  %v580_v1 = vld [vmem:[%s951_s1 + $0x40] sm:$0xf0]  ;;  %v493_v3 = vld [vmem:[%s951_s1 + $0x20] sm:$0xf] }
  0x23   : > { %317 = vmatpush.bf16.msra.mxu1 %v526_v23  ;;  %v506_v2 = vor.u32 %v580_v1, %v505_v0  ;;  %v577_v4 = vld [vmem:[%s951_s1 + $0x28] sm:$0xf0]  ;;  %v481_v9 = vld [vmem:[%s951_s1 + $0x8] sm:$0xf]  ;;  %v574_v10 = vld [vmem:[%s951_s1 + $0x10] sm:$0xf0] }
  0x24   : > { %v494_v8 = vor.u32 %v577_v4, %v493_v3  ;;  %v482_v11 = vor.u32 %v574_v10, %v481_v9  ;;  %s469_s29 = sshll.u32 %s132_s27, 3  ;;  %s405_s7 = sshll.u32 %s401_s4, 4  ;;  %s406_s7 = int_to_ptr.hbm [resolvable:$true] %s405_s7 }
  0x25   : > { %328 = vmatpush.bf16.msra.mxu2 %v554_v54  ;;  %s134_s5 = scalar_lea.vmem [#allocation2], %s469_s29  ;;  %s653_s14 = sshra.s32 %s406_s7, 4  ;;  %s654_s14 = int_to_ptr.hbm [resolvable:$true] %s653_s14 }
  0x26   : > { %305 = vmatpush.bf16.msra.mxu0 %v510_v28  ;;  %s403_s6 = sshll.u32 %s134_s5, 4  ;;  %s655_s13 = scalar_lea.hbm %s654_s14, 8  ;;  %s404_s6 = int_to_ptr.vmem [resolvable:$true] %s403_s6 }
  0x27   : > { %318 = vmatpush.bf16.msra.mxu1 %v514_v29  ;;  %p656_p11 = scmp.ne.s32.totalorder %s654_s14, %s655_s13  ;;  %p660_p0 = scmp.lt.s32.totalorder %s654_s14, %s952_s2 }
  0x28   : > { %p661_p1 = scmp.lt.s32.totalorder %s659_s21, %s655_s13 }
  0x29   : > { %329 = vmatpush.bf16.msra.mxu2 %v542_v57  ;;  %p657_p12 = pnand %p656_p11, %p756_p5 }
  0x2a   : > { %306 = vmatpush.bf16.msra.mxu0 %v498_v34  ;;  %p662_p2 = por %p661_p1, %p660_p0 }
  0x2b   : > { %319 = vmatpush.bf16.msra.mxu1 %v502_v35  ;;  %p658_p13 = pneg %p657_p12 }
  0x2d   : > { %330 = vmatpush.bf16.msra.mxu2 %v530_v60  ;;  %p663_p3 = pnand %p662_p2, %p658_p13 }
  0x2e   : > { %307 = vmatpush.bf16.msra.mxu0 %v486_v40 }
  0x2f   : > { %320 = vmatpush.bf16.msra.mxu1 %v490_v41 }
  0x31   : > { %331 = vmatpush.bf16.msra.mxu2 %v518_v63 }
  0x32   : > { %308 = vmatpush.bf16.msra.mxu0 %v474_v46 }
  0x33   : > { %321 = vmatpush.bf16.msra.mxu1 %v478_v47 }
  0x35   : > { %309 = vmatmul.bf16.vlgmr.msra.gmra.mxu0 %v140_v48  ;;  %332 = vmatpush.bf16.msra.mxu2 %v506_v2 }
  0x36   : > { %322 = vmatmul.bf16.vlgmr.msra.gmra.mxu1 %v140_v48 }
  0x39   : > { %333 = vmatpush.bf16.msra.mxu2 %v494_v8 }
  0x3d   : > { %334 = vmatpush.bf16.msra.mxu2 %v482_v11 }
  0x40   : > { %335 = vmatmul.bf16.vlgmr.msra.gmra.mxu2 %v140_v48 }
  0xb2   : > { %v310_v5 = vpop.f32.mrf.mxu0 }
  0xb3   : > { %v323_v6 = vpop.f32.mrf.mxu1  ;;  %v340_v12 = vpack.c.bf16 %v310_v5, %v310_v5 }
  0xb4   : > { %v341_v7 = vpack.c.bf16 %v323_v6, %v323_v6 }
  0xb6   : > { %349 = vmatpush.bf16.xpose.msra.mxu3 %v341_v7 }
  0xba   : > { %v312_v13 = vpop.f32.mrf.mxu0 }
  0xbb   : > { %v325_v14 = vpop.f32.mrf.mxu1 }
  0xbd   : > { %350 = vmatmul.bf16.vlgmr.msra.gmra.mxu3 %v340_v12 }
  0xc3   : > { %v336_v17 = vpop.f32.mrf.mxu2 }
  0xc4   : > { %v366_v18 = vpack.c.bf16 %v336_v17, %v336_v17 }
  0xc6   : > { %v372_v19 = vsel %vm370_vm1, %v366_v18, 0 }
  0xc7   : > { %381 = vmatpush.bf16.msrb.mxu3 %v372_v19 }
  0xcb   : > { %v338_v21 = vpop.f32.mrf.mxu2 }
 0x140   : > { %v351_v15 = vpop.f32.mrf.mxu3 }
 0x141   : > { %v356_v16 = vsel %vm355_vm0, %v351_v15, -inf }
 0x142   : > { %357 = vmax.xlane.f32.xlu0 %v356_v16 }
 0x148   : > { %v353_v20 = vpop.f32.mrf.mxu3 }
 0x1b5   : > { %v358_v22 = vpop.xlane.xlu0 %357 }
 0x1b6   : > { %v359_v23 = vsub.f32 %v351_v15, %v358_v22 }
 0x1b8   : > { %v360_v24 = vmul.f32 1.442695, %v359_v23 }
 0x1ba   : > { %635 = vpow2.f32 %v360_v24 }
 0x1c0   : > { %v636_v25 = vpop.eup %635 }
 0x1c1   : > { %v362_v26 = vsel %vm355_vm0, %v636_v25, 0.0  ;;  %v365_v27 = vpack.c.bf16 %v636_v25, %v636_v25 }
 0x1c2   : > { %363 = vadd.xlane.f32.xlu0 %v362_v26 }
 0x1c3   : > { %567 = vmatmul.msk.bf16.vlgmr.msrb.gmra.mxu3 %vm355_vm0, %v365_v27 }
 0x235   : > { %v364_v28 = vpop.xlane.xlu0 %363 }
 0x236   : > { %637 = vrcp.f32 %v364_v28 }
 0x23c   : > { %v638_v29 = vpop.eup %637 }
 0x246   : > { %v383_v30 = vpop.f32.mrf.mxu3 }
 0x247   : > { %v388_v31 = vmul.f32 %v638_v29, %v383_v30 }
 0x249   : > { %389 = vst [vmem:[%s134_s5] sm:$0xff] %v388_v31 }
 0x24a   : > { %666 = shalt.err (!%p663_p3)
}
 0x24b   : > { %596 = dma.vmem_to_hbm [thread:$0]  (%p756_p5), %s404_s6, 128, %s406_s7, %s391_s8  }
 0x24e   : > { %v385_v32 = vpop.f32.mrf.mxu3 }
 0x24f PF: > { %p602_p4 = scmp.ge.s32.totalorder %s701_s12, 2  ;;  %s417_s24 = sand.u32 1, %s689_s9  }
 0x250   : > { %s418_s25 = scalar_lea.sflag [#allocation3], %s417_s24 }
 0x251   : > { %p599_p7 = pnand %p602_p4, %p760_p6 }
 0x253   : > { %p600_p8 = pneg %p599_p7 }
 0x255   : > { %684 = dma.done.wait (%p600_p8), %s418_s25, 128  }
 0x256   : > { %686 = vsyncadd (%p600_p8), %s418_s25, 4294967168  ;;  %p12_p9 = scmp.ge.s32.totalorder %s743_s15, 4   ;;  %s955_s9 = smov %s693_s10 }
 0x257   : > { %s956_s10 = smov %s697_s11  ;;  %s957_s11 = smov %s754_s18 }
 0x258   : > { %s958_s12 = smov %s743_s15  ;;  %14 = sbr.rel (!%p12_p9) target bundleno = 3 (0x3), region = 63 }
 0x25d   :  { %424 = vsyncpa [#allocation3], 1 }
 0x25e   :  { %426 = vsyncpa [#allocation3 + $0x1], 1 }

</bundles_post_ra>
